<compile_context>
chip_gen: v7x
topology: tpu7x:2x2x1
jax: 0.10.0
libtpu: 0.0.40
codegen_flags: <defaults>
</compile_context>

<pallas_src>
from functools import partial

import jax
import jax.numpy as jnp
from jax.experimental import pallas as pl
from jax.experimental.pallas import tpu as pltpu


def _round_up(n, m):
    return ((n + m - 1) // m) * m


# -----------------------------------------------------------------------------
# Kernel: one lane-dense tile of the batch-packed time axis per grid step.
# -----------------------------------------------------------------------------
def temporal_block_kernel(x_ref, w1a_ref, w2f_ref, b2_ref, o_ref,
                          xw_ref, carry_ref, h1s_ref, *,
                          K, dilation, pad, l_tile):
    """
    Packed-column layout (built host-side): each batch owns seg = 2*pad + L columns
    laid out as [2*pad zeros | L data]; segments are concatenated along the lane axis
    and each row is padded to a multiple of l_tile.  Channel row 0 is a 0/1 "ones"
    channel that is 1 exactly on valid data columns; it carries the conv1/residual
    biases through the MXU and doubles as the output validity mask.

    x_ref    : (Ci, l_tile)           bf16  current input tile (channel 0 = ones).
    w1a_ref  : (K, 2*Co, Ci)          bf16  per-tap conv1 weights (rows [0, Co)), with
                                      b1 on the ones channel of tap K-1; residual 1x1
                                      conv + bd in rows [Co, 2*Co) of tap K-1.
    w2f_ref  : (K, Co, Co)            bf16  per-tap conv2 weights.
    b2_ref   : (Co, 1)                f32   conv2 bias.
    o_ref    : (Co, l_tile)           bf16  lane-dense output tile.
    xw_ref   : (Ci, 2*pad + l_tile)   bf16  scratch: [left context | current tile].
    carry_ref: (Ci, 2*pad)            bf16  scratch: left context carried across tiles.
    h1s_ref  : (Co, l_tile + pad)     bf16  scratch: conv2 input window (h1 + halo).
    """
    co = o_ref.shape[0]
    lt = l_tile
    t = pl.program_id(1)

    # First tile of a row: its left context is causal zero padding.
    @pl.when(t == 0)
    def _():
        carry_ref[...] = jnp.zeros_like(carry_ref)

    # Working window = [carry (2*pad cols) | current tile (lt cols)].
    xw_ref[:, :2 * pad] = carry_ref[...]
    xw_ref[:, 2 * pad:] = x_ref[...]
    carry_ref[...] = x_ref[:, lt - 2 * pad:]        # left context for the next tile

    # ---- conv1 + residual 1x1 conv + b1/bd: K per-tap MXU matmuls, f32 accumulate.
    # (No materialized im2col RHS -> no large bf16 temporaries / vst pressure.)
    pre = jnp.dot(w1a_ref[0], xw_ref[:, :lt + pad],
                  preferred_element_type=jnp.float32)            # (2*Co, lt+pad)
    for j in range(1, K):
        pre += jnp.dot(w1a_ref[j],
                       xw_ref[:, j * dilation: j * dilation + lt + pad],
                       preferred_element_type=jnp.float32)

    # Columns in a segment's 2*pad margin see only stored zeros and receive no bias
    # (ones channel is 0 there), so h1 is exactly conv2's causal zero padding there —
    # no iota/where masking needed.
    h1 = jnp.maximum(pre[:co], 0.0)                              # (Co, lt+pad)
    res = pre[co:, pad:]                                         # (Co, lt) = wd.x + bd

    # ---- conv2: K per-tap matmuls over the h1 window held in VMEM scratch.
    h1s_ref[...] = h1.astype(h1s_ref.dtype)
    acc = jnp.dot(w2f_ref[0], h1s_ref[:, :lt],
                  preferred_element_type=jnp.float32)            # (Co, lt)
    for j in range(1, K):
        acc += jnp.dot(w2f_ref[j],
                       h1s_ref[:, j * dilation: j * dilation + lt],
                       preferred_element_type=jnp.float32)
    h2 = jnp.maximum(acc + b2_ref[...], 0.0)

    # TODO(synk): dropout1/dropout2 are identity in eval (inference) mode; no RNG.
    # Ones channel == validity mask: zero per-segment margins / padded tail so the
    # packed output is clean and can be consumed without host-side cleanup.
    valid = x_ref[0:1, :].astype(jnp.float32)                    # (1, lt)
    o_ref[...] = (jnp.maximum(h2 + res, 0.0) * valid).astype(o_ref.dtype)


# -----------------------------------------------------------------------------
# Host wrapper: layout preparation + pallas_call.
# -----------------------------------------------------------------------------
def temporal_block(x, params, *, K, dilation, pad=None, l_tile=512, n_rows=1,
                   matmul_dtype=jnp.bfloat16, out_dtype=jnp.bfloat16,
                   packed_output=False):
    """TemporalBlock forward (eval).  x: (B, C_in, L) -> (B, C_out, L).

    packed_output=True returns the kernel-native (n_rows, Co, Wrow) bf16 layout with
    invalid columns already zeroed (no host-side unpack copy — fuse into the consumer).
    n_rows > 1 splits batches into independent rows => a megacore-parallel grid axis.
    """
    if pad is None:
        pad = (K - 1) * dilation
    assert pad == (K - 1) * dilation and pad >= 1
    assert l_tile % 128 == 0
    B, C_in, L = x.shape
    C_out = params["w1"].shape[0]

    sub = 16 if matmul_dtype == jnp.bfloat16 else 8
    Ci = _round_up(1 + C_in, sub)          # +1: ones / bias / mask channel (row 0)
    Co = _round_up(C_out, sub)

    seg = 2 * pad + L                      # per-batch packed segment
    n_rows = max(1, min(n_rows, B))
    bpr = -(-B // n_rows)                  # batches per row
    wraw = bpr * seg
    lt = min(l_tile, 128 * pl.cdiv(wraw, 128))     # don't tile wider than needed
    lt = max(lt, 128 * pl.cdiv(2 * pad, 128))      # tile must cover the causal context
    Wrow = lt * pl.cdiv(wraw, lt)

    # ---- host-side packing (the only full-tensor relayout; replaces the old pad/cast
    # copy).  TODO(synk): in a stacked TCN this repack could fuse into the producer.
    xb = x.astype(matmul_dtype)
    ones = jnp.ones((B, 1, L), matmul_dtype)
    packed = jnp.concatenate([ones, xb], axis=1)                     # (B, 1+C_in, L)
    packed = jnp.pad(packed, ((0, n_rows * bpr - B),
                              (0, Ci - (1 + C_in)),
                              (2 * pad, 0)))                         # (B', Ci, seg)
    packed = packed.reshape(n_rows, bpr, Ci, seg).transpose(0, 2, 1, 3)
    packed = packed.reshape(n_rows, Ci, bpr * seg)
    packed = jnp.pad(packed, ((0, 0), (0, 0), (0, Wrow - bpr * seg)))

    # ---- weight layout (pure layout, tiny): per-tap matrices; b1/bd ride the ones
    # channel of tap K-1; residual 1x1 conv occupies rows [Co, 2*Co).
    w1a = jnp.zeros((K, 2 * Co, Ci), jnp.float32)
    w1a = w1a.at[:, :C_out, 1:1 + C_in].set(jnp.transpose(params["w1"], (2, 0, 1)))
    w1a = w1a.at[K - 1, :C_out, 0].set(params["b1"][:, 0])
    w1a = w1a.at[K - 1, Co:Co + C_out, 1:1 + C_in].set(params["wd"])
    w1a = w1a.at[K - 1, Co:Co + C_out, 0].set(params["bd"][:, 0])
    w1a = w1a.astype(matmul_dtype)
    w2f = jnp.zeros((K, Co, Co), jnp.float32)
    w2f = w2f.at[:, :C_out, :C_out].set(jnp.transpose(params["w2"], (2, 0, 1)))
    w2f = w2f.astype(matmul_dtype)
    b2p = jnp.zeros((Co, 1), jnp.float32).at[:C_out].set(params["b2"])

    kernel = partial(temporal_block_kernel, K=K, dilation=dilation, pad=pad, l_tile=lt)
    out = pl.pallas_call(
        kernel,
        out_shape=jax.ShapeDtypeStruct((n_rows, Co, Wrow), out_dtype),
        grid_spec=pltpu.PrefetchScalarGridSpec(
            num_scalar_prefetch=0,
            grid=(n_rows, Wrow // lt),
            in_specs=[
                pl.BlockSpec((pl.Squeezed(), Ci, lt), lambda r, t: (r, 0, t)),
                pl.BlockSpec((K, 2 * Co, Ci), lambda r, t: (0, 0, 0)),
                pl.BlockSpec((K, Co, Co), lambda r, t: (0, 0, 0)),
                pl.BlockSpec((Co, 1), lambda r, t: (0, 0)),
            ],
            out_specs=pl.BlockSpec((pl.Squeezed(), Co, lt), lambda r, t: (r, 0, t)),
            scratch_shapes=[
                pltpu.VMEM((Ci, 2 * pad + lt), matmul_dtype),   # [context | tile]
                pltpu.VMEM((Ci, 2 * pad), matmul_dtype),        # carried left context
                pltpu.VMEM((Co, lt + pad), matmul_dtype),       # conv2 input window
            ],
        ),
        compiler_params=pltpu.CompilerParams(
            dimension_semantics=("parallel", "arbitrary")),
    )(packed, w1a, w2f, b2p)

    if packed_output:
        return out
    # Dense (B, C_out, L) view — only needed when the consumer can't take the packed
    # layout; it is the lone host-side re-layout left.
    y = out[:, :, :bpr * seg].reshape(n_rows, Co, bpr, seg).transpose(0, 2, 1, 3)
    y = y.reshape(n_rows * bpr, Co, seg)
    return y[:B, :C_out, 2 * pad:]


# -----------------------------------------------------------------------------
# Parameters & pure-JAX reference.
# -----------------------------------------------------------------------------
def _weight_norm(v):
    """Effective weight of torch.nn.utils.weight_norm with g initialized to ||v||."""
    norm = jnp.sqrt(jnp.sum(v * v, axis=tuple(range(1, v.ndim)), keepdims=True))
    return norm * v / norm


def init_params(key, C_in, C_out, K):
    ks = jax.random.split(key, 6)
    v1 = 0.1 * jax.random.normal(ks[0], (C_out, C_in, K), jnp.float32)
    v2 = 0.1 * jax.random.normal(ks[1], (C_out, C_out, K), jnp.float32)
    wd = 0.01 * jax.random.normal(ks[2], (C_out, C_in), jnp.float32)
    b1 = 0.1 * jax.random.normal(ks[3], (C_out, 1), jnp.float32)
    b2 = 0.1 * jax.random.normal(ks[4], (C_out, 1), jnp.float32)
    bd = 0.1 * jax.random.normal(ks[5], (C_out, 1), jnp.float32)
    return dict(w1=_weight_norm(v1), b1=b1, w2=_weight_norm(v2), b2=b2,
                wd=wd, bd=bd)


def reference(x, params, *, K, dilation, pad, matmul_dtype=jnp.bfloat16):
    """Pure-JAX reference mirroring the PyTorch module (eval mode): symmetric pad +
    Chomp1d, bf16 matmul inputs, f32 accumulation."""
    w1 = params["w1"].astype(matmul_dtype)
    w2 = params["w2"].astype(matmul_dtype)
    wd = params["wd"].astype(matmul_dtype)
    xc = x.astype(matmul_dtype)

    def conv1d(h, w, b):
        y = jax.lax.conv_general_dilated(
            h, w, window_strides=(1,), padding=[(pad, pad)],
            rhs_dilation=(dilation,), dimension_numbers=("NCH", "OIH", "NCH"),
            preferred_element_type=jnp.float32)
        y = y[:, :, : y.shape[2] - pad]                          # Chomp1d
        return y + b[None, :, :]

    h = jax.nn.relu(conv1d(xc, w1, params["b1"]))
    h = jax.nn.relu(conv1d(h.astype(matmul_dtype), w2, params["b2"]))
    res = jnp.einsum("oc,bcl->bol", wd, xc,
                     preferred_element_type=jnp.float32) + params["bd"][None, :, :]
    return jax.nn.relu(h + res)


if __name__ == "__main__":
    B, C_in, C_out, L = 2, 4, 8, 16
    K, dilation = 3, 2
    pad = (K - 1) * dilation

    key = jax.random.PRNGKey(0)
    kx, kp = jax.random.split(key)
    x = jax.random.normal(kx, (B, C_in, L), jnp.float32)
    params = init_params(kp, C_in, C_out, K)

    out = temporal_block(x, params, K=K, dilation=dilation, pad=pad)
    out = jax.block_until_ready(out)

    ref = reference(x, params, K=K, dilation=dilation, pad=pad)
    assert out.shape == (B, C_out, L)
    assert jnp.allclose(out.astype(jnp.float32), ref, atol=2e-2, rtol=2e-2), \
        "mismatch vs JAX reference"

    print("KERNEL_OK")
</pallas_src>

<mosaic_0001>
module attributes {stable_mosaic.version = 11 : i64} {
  func.func @temporal_block_kernel(%arg0: i32, %arg1: i32, %arg2: memref<1x16x128xbf16, #tpu.memory_space<vmem>>, %arg3: memref<3x32x16xbf16, #tpu.memory_space<vmem>>, %arg4: memref<3x16x16xbf16, #tpu.memory_space<vmem>>, %arg5: memref<16x1xf32, #tpu.memory_space<vmem>>, %arg6: memref<1x16x128xbf16, #tpu.memory_space<vmem>>, %arg7: memref<16x136xbf16, #tpu.memory_space<vmem>>, %arg8: memref<16x8xbf16, #tpu.memory_space<vmem>>, %arg9: memref<16x132xbf16, #tpu.memory_space<vmem>>) attributes {dimension_semantics = [#tpu.dimension_semantics<parallel>, #tpu.dimension_semantics<arbitrary>], iteration_bounds = array<i64: 1, 1>, scalar_prefetch = 0 : i64, scratch_operands = 3 : i64, tpu.core_type = #tpu.core_type<tc>, window_params = [{transform_indices = @transform_0, window_bounds = array<i64: 1, 16, 128>}, {pipeline_mode = #tpu.pipeline_mode<synchronous>, transform_indices = @transform_1, window_bounds = array<i64: 3, 32, 16>}, {pipeline_mode = #tpu.pipeline_mode<synchronous>, transform_indices = @transform_2, window_bounds = array<i64: 3, 16, 16>}, {pipeline_mode = #tpu.pipeline_mode<synchronous>, transform_indices = @transform_3, window_bounds = array<i64: 16, 1>}, {transform_indices = @transform_4, window_bounds = array<i64: 1, 16, 128>}]} {
    %c0_i32 = arith.constant 0 : i32
    %0 = arith.cmpi eq, %arg1, %c0_i32 : i32
    %1 = arith.extui %0 : i1 to i32
    %c0_i32_0 = arith.constant 0 : i32
    %2 = arith.cmpi ne, %1, %c0_i32_0 : i32
    scf.if %2 {
      %cst_57 = arith.constant 0.000000e+00 : bf16
      %62 = vector.broadcast %cst_57 : bf16 to vector<16x8xbf16>
      %c0_58 = arith.constant 0 : index
      %c0_59 = arith.constant 0 : index
      %63 = vector.load %arg8[%c0_58, %c0_59] : memref<16x8xbf16, #tpu.memory_space<vmem>>, vector<16x8xbf16>
      tpu.vector_store %arg8[%c0_58, %c0_59], %62 {strides = array<i32>} : memref<16x8xbf16, #tpu.memory_space<vmem>>, vector<16x8xbf16>,
    } else {
    }
    %c0 = arith.constant 0 : index
    %c0_1 = arith.constant 0 : index
    %3 = vector.load %arg8[%c0, %c0_1] : memref<16x8xbf16, #tpu.memory_space<vmem>>, vector<16x8xbf16>
    %c0_2 = arith.constant 0 : index
    %c0_3 = arith.constant 0 : index
    %4 = vector.load %arg7[%c0_2, %c0_3] : memref<16x136xbf16, #tpu.memory_space<vmem>>, vector<16x8xbf16>
    tpu.vector_store %arg7[%c0_2, %c0_3], %3 {strides = array<i32>} : memref<16x136xbf16, #tpu.memory_space<vmem>>, vector<16x8xbf16>,
    %c0_4 = arith.constant 0 : index
    %c0_5 = arith.constant 0 : index
    %c0_6 = arith.constant 0 : index
    %5 = vector.load %arg2[%c0_4, %c0_5, %c0_6] : memref<1x16x128xbf16, #tpu.memory_space<vmem>>, vector<1x16x128xbf16>
    %6 = vector.shape_cast %5 : vector<1x16x128xbf16> to vector<16x128xbf16>
    %c0_7 = arith.constant 0 : index
    %c8 = arith.constant 8 : index
    %7 = vector.load %arg7[%c0_7, %c8] : memref<16x136xbf16, #tpu.memory_space<vmem>>, vector<16x128xbf16>
    tpu.vector_store %arg7[%c0_7, %c8], %6 {strides = array<i32>} : memref<16x136xbf16, #tpu.memory_space<vmem>>, vector<16x128xbf16>,
    %c0_8 = arith.constant 0 : index
    %c0_9 = arith.constant 0 : index
    %c120 = arith.constant 120 : index
    %8 = vector.load %arg2[%c0_8, %c0_9, %c120] : memref<1x16x128xbf16, #tpu.memory_space<vmem>>, vector<1x16x8xbf16>
    %9 = vector.shape_cast %8 : vector<1x16x8xbf16> to vector<16x8xbf16>
    %c0_10 = arith.constant 0 : index
    %c0_11 = arith.constant 0 : index
    %10 = vector.load %arg8[%c0_10, %c0_11] : memref<16x8xbf16, #tpu.memory_space<vmem>>, vector<16x8xbf16>
    tpu.vector_store %arg8[%c0_10, %c0_11], %9 {strides = array<i32>} : memref<16x8xbf16, #tpu.memory_space<vmem>>, vector<16x8xbf16>,
    %c0_12 = arith.constant 0 : index
    %c0_13 = arith.constant 0 : index
    %c0_14 = arith.constant 0 : index
    %11 = vector.load %arg3[%c0_12, %c0_13, %c0_14] : memref<3x32x16xbf16, #tpu.memory_space<vmem>>, vector<1x32x16xbf16>
    %12 = vector.shape_cast %11 : vector<1x32x16xbf16> to vector<32x16xbf16>
    %c0_15 = arith.constant 0 : index
    %c0_16 = arith.constant 0 : index
    %13 = vector.load %arg7[%c0_15, %c0_16] : memref<16x136xbf16, #tpu.memory_space<vmem>>, vector<16x132xbf16>
    %cst = arith.constant dense<0.000000e+00> : vector<32x132xf32>
    %14 = tpu.matmul %12, %13, %cst {dimension_numbers = #tpu.dot_dimension_numbers<[1], [0], [0], [1], [0, 0, 1, 1], [], []>} : vector<32x16xbf16>, vector<16x132xbf16>, vector<32x132xf32> -> vector<32x132xf32>
    %c1 = arith.constant 1 : index
    %c0_17 = arith.constant 0 : index
    %c0_18 = arith.constant 0 : index
    %15 = vector.load %arg3[%c1, %c0_17, %c0_18] : memref<3x32x16xbf16, #tpu.memory_space<vmem>>, vector<1x32x16xbf16>
    %16 = vector.shape_cast %15 : vector<1x32x16xbf16> to vector<32x16xbf16>
    %c0_19 = arith.constant 0 : index
    %c2 = arith.constant 2 : index
    %17 = vector.load %arg7[%c0_19, %c2] : memref<16x136xbf16, #tpu.memory_space<vmem>>, vector<16x132xbf16>
    %cst_20 = arith.constant dense<0.000000e+00> : vector<32x132xf32>
    %18 = tpu.matmul %16, %17, %cst_20 {dimension_numbers = #tpu.dot_dimension_numbers<[1], [0], [0], [1], [0, 0, 1, 1], [], []>} : vector<32x16xbf16>, vector<16x132xbf16>, vector<32x132xf32> -> vector<32x132xf32>
    %19 = arith.addf %14, %18 : vector<32x132xf32>
    %c2_21 = arith.constant 2 : index
    %c0_22 = arith.constant 0 : index
    %c0_23 = arith.constant 0 : index
    %20 = vector.load %arg3[%c2_21, %c0_22, %c0_23] : memref<3x32x16xbf16, #tpu.memory_space<vmem>>, vector<1x32x16xbf16>
    %21 = vector.shape_cast %20 : vector<1x32x16xbf16> to vector<32x16xbf16>
    %c0_24 = arith.constant 0 : index
    %c4 = arith.constant 4 : index
    %22 = vector.load %arg7[%c0_24, %c4] : memref<16x136xbf16, #tpu.memory_space<vmem>>, vector<16x132xbf16>
    %cst_25 = arith.constant dense<0.000000e+00> : vector<32x132xf32>
    %23 = tpu.matmul %21, %22, %cst_25 {dimension_numbers = #tpu.dot_dimension_numbers<[1], [0], [0], [1], [0, 0, 1, 1], [], []>} : vector<32x16xbf16>, vector<16x132xbf16>, vector<32x132xf32> -> vector<32x132xf32>
    %24 = arith.addf %19, %23 : vector<32x132xf32>
    %25 = vector.extract_strided_slice %24 {offsets = [0, 0], sizes = [16, 132], strides = [1, 1]} : vector<32x132xf32> to vector<16x132xf32>
    %cst_26 = arith.constant 0.000000e+00 : f32
    %26 = vector.broadcast %cst_26 : f32 to vector<16x132xf32>
    %27 = arith.maximumf %25, %26 : vector<16x132xf32>
    %28 = vector.extract_strided_slice %24 {offsets = [16, 4], sizes = [16, 128], strides = [1, 1]} : vector<32x132xf32> to vector<16x128xf32>
    %29 = arith.truncf %27 : vector<16x132xf32> to vector<16x132xbf16>
    %c0_27 = arith.constant 0 : index
    %c0_28 = arith.constant 0 : index
    %30 = vector.load %arg9[%c0_27, %c0_28] : memref<16x132xbf16, #tpu.memory_space<vmem>>, vector<16x132xbf16>
    tpu.vector_store %arg9[%c0_27, %c0_28], %29 {strides = array<i32>} : memref<16x132xbf16, #tpu.memory_space<vmem>>, vector<16x132xbf16>,
    %c0_29 = arith.constant 0 : index
    %c0_30 = arith.constant 0 : index
    %c0_31 = arith.constant 0 : index
    %31 = vector.load %arg4[%c0_29, %c0_30, %c0_31] : memref<3x16x16xbf16, #tpu.memory_space<vmem>>, vector<1x16x16xbf16>
    %32 = vector.shape_cast %31 : vector<1x16x16xbf16> to vector<16x16xbf16>
    %c0_32 = arith.constant 0 : index
    %c0_33 = arith.constant 0 : index
    %33 = vector.load %arg9[%c0_32, %c0_33] : memref<16x132xbf16, #tpu.memory_space<vmem>>, vector<16x128xbf16>
    %cst_34 = arith.constant dense<0.000000e+00> : vector<16x128xf32>
    %34 = tpu.matmul %32, %33, %cst_34 {dimension_numbers = #tpu.dot_dimension_numbers<[1], [0], [0], [1], [0, 0, 1, 1], [], []>} : vector<16x16xbf16>, vector<16x128xbf16>, vector<16x128xf32> -> vector<16x128xf32>
    %c1_35 = arith.constant 1 : index
    %c0_36 = arith.constant 0 : index
    %c0_37 = arith.constant 0 : index
    %35 = vector.load %arg4[%c1_35, %c0_36, %c0_37] : memref<3x16x16xbf16, #tpu.memory_space<vmem>>, vector<1x16x16xbf16>
    %36 = vector.shape_cast %35 : vector<1x16x16xbf16> to vector<16x16xbf16>
    %c0_38 = arith.constant 0 : index
    %c2_39 = arith.constant 2 : index
    %37 = vector.load %arg9[%c0_38, %c2_39] : memref<16x132xbf16, #tpu.memory_space<vmem>>, vector<16x128xbf16>
    %cst_40 = arith.constant dense<0.000000e+00> : vector<16x128xf32>
    %38 = tpu.matmul %36, %37, %cst_40 {dimension_numbers = #tpu.dot_dimension_numbers<[1], [0], [0], [1], [0, 0, 1, 1], [], []>} : vector<16x16xbf16>, vector<16x128xbf16>, vector<16x128xf32> -> vector<16x128xf32>
    %39 = arith.addf %34, %38 : vector<16x128xf32>
    %c2_41 = arith.constant 2 : index
    %c0_42 = arith.constant 0 : index
    %c0_43 = arith.constant 0 : index
    %40 = vector.load %arg4[%c2_41, %c0_42, %c0_43] : memref<3x16x16xbf16, #tpu.memory_space<vmem>>, vector<1x16x16xbf16>
    %41 = vector.shape_cast %40 : vector<1x16x16xbf16> to vector<16x16xbf16>
    %c0_44 = arith.constant 0 : index
    %c4_45 = arith.constant 4 : index
    %42 = vector.load %arg9[%c0_44, %c4_45] : memref<16x132xbf16, #tpu.memory_space<vmem>>, vector<16x128xbf16>
    %cst_46 = arith.constant dense<0.000000e+00> : vector<16x128xf32>
    %43 = tpu.matmul %41, %42, %cst_46 {dimension_numbers = #tpu.dot_dimension_numbers<[1], [0], [0], [1], [0, 0, 1, 1], [], []>} : vector<16x16xbf16>, vector<16x128xbf16>, vector<16x128xf32> -> vector<16x128xf32>
    %44 = arith.addf %39, %43 : vector<16x128xf32>
    %c0_47 = arith.constant 0 : index
    %c0_48 = arith.constant 0 : index
    %45 = vector.load %arg5[%c0_47, %c0_48] : memref<16x1xf32, #tpu.memory_space<vmem>>, vector<16x1xf32>
    %46 = vector.broadcast %45 : vector<16x1xf32> to vector<16x128xf32>
    %47 = arith.addf %44, %46 : vector<16x128xf32>
    %cst_49 = arith.constant 0.000000e+00 : f32
    %48 = vector.broadcast %cst_49 : f32 to vector<16x128xf32>
    %49 = arith.maximumf %47, %48 : vector<16x128xf32>
    %c0_50 = arith.constant 0 : index
    %c0_51 = arith.constant 0 : index
    %c0_52 = arith.constant 0 : index
    %50 = vector.load %arg2[%c0_50, %c0_51, %c0_52] : memref<1x16x128xbf16, #tpu.memory_space<vmem>>, vector<1x1x128xbf16>
    %51 = vector.shape_cast %50 : vector<1x1x128xbf16> to vector<1x128xbf16>
    %52 = arith.extf %51 : vector<1x128xbf16> to vector<1x128xf32>
    %53 = arith.addf %49, %28 : vector<16x128xf32>
    %cst_53 = arith.constant 0.000000e+00 : f32
    %54 = vector.broadcast %cst_53 : f32 to vector<16x128xf32>
    %55 = arith.maximumf %53, %54 : vector<16x128xf32>
    %56 = vector.broadcast %52 : vector<1x128xf32> to vector<16x128xf32>
    %57 = arith.mulf %55, %56 : vector<16x128xf32>
    %58 = arith.truncf %57 : vector<16x128xf32> to vector<16x128xbf16>
    %c0_54 = arith.constant 0 : index
    %c0_55 = arith.constant 0 : index
    %c0_56 = arith.constant 0 : index
    %59 = vector.load %arg6[%c0_54, %c0_55, %c0_56] : memref<1x16x128xbf16, #tpu.memory_space<vmem>>, vector<1x16x128xbf16>
    %60 = vector.shape_cast %59 : vector<1x16x128xbf16> to vector<16x128xbf16>
    %61 = vector.shape_cast %58 : vector<16x128xbf16> to vector<1x16x128xbf16>
    tpu.vector_store %arg6[%c0_54, %c0_55, %c0_56], %61 {strides = array<i32>} : memref<1x16x128xbf16, #tpu.memory_space<vmem>>, vector<1x16x128xbf16>,
    return
  }
  func.func @transform_0(%arg0: i32, %arg1: i32) -> (i32, i32, i32) {
    %c0_i32 = arith.constant 0 : i32
    %c0_i32_0 = arith.constant 0 : i32
    return %arg0, %c0_i32, %arg1 : i32, i32, i32
  }
  func.func @transform_1(%arg0: i32, %arg1: i32) -> (i32, i32, i32) {
    %c0_i32 = arith.constant 0 : i32
    %c0_i32_0 = arith.constant 0 : i32
    %c0_i32_1 = arith.constant 0 : i32
    %c0_i32_2 = arith.constant 0 : i32
    return %c0_i32, %c0_i32_0, %c0_i32_1 : i32, i32, i32
  }
  func.func @transform_2(%arg0: i32, %arg1: i32) -> (i32, i32, i32) {
    %c0_i32 = arith.constant 0 : i32
    %c0_i32_0 = arith.constant 0 : i32
    %c0_i32_1 = arith.constant 0 : i32
    %c0_i32_2 = arith.constant 0 : i32
    return %c0_i32, %c0_i32_0, %c0_i32_1 : i32, i32, i32
  }
  func.func @transform_3(%arg0: i32, %arg1: i32) -> (i32, i32) {
    %c0_i32 = arith.constant 0 : i32
    %c0_i32_0 = arith.constant 0 : i32
    %c0_i32_1 = arith.constant 0 : i32
    return %c0_i32, %c0_i32_0 : i32, i32
  }
  func.func @transform_4(%arg0: i32, %arg1: i32) -> (i32, i32, i32) {
    %c0_i32 = arith.constant 0 : i32
    %c0_i32_0 = arith.constant 0 : i32
    return %arg0, %c0_i32, %arg1 : i32, i32, i32
  }
}

</mosaic_0001>

<bundles_post_ra>
// kernel: tpu_custom_call.1
= control target key start
LH: loop header
LB: loop body
LE: loop exit
PB: predicated region body
PF: predicated region fallthrough
CT: control target
= control target key end

     0   :  { %vm23_vm0 = vcmask 64512   ;;  %s682_s17 = smov 8   ;;  %v683_v1 = vmov 0   ;;  %s806_s0 = inlined_call_operand.vmem [shape: bf16[1,16,128], index: 0, kind: input, shape index: {}]   ;;  %s807_s1 = inlined_call_operand.vmem [shape: bf16[3,32,16], index: 1, kind: input, shape index: {}]   ;;  %s808_s2 = inlined_call_operand.vmem [shape: bf16[3,16,16], index: 2, kind: input, shape index: {}]   ;;  %s809_s3 = inlined_call_operand.vmem [shape: f32[16,1], index: 3, kind: input, shape index: {}]   ;;  %s810_s4 = inlined_call_operand.hbm [shape: bf16[1,16,128], index: 4, kind: output, shape index: {}]  }
   0x1   :  { %v647_v0 = vld [vmem:[%s806_s0] sm:$0xff]   ;;  %24 = vst.msk [vmem:[#allocation3] sm:$0xff] %vm23_vm0, %v683_v1  ;;  %191 = vmatprep.mubr.bf16.mxu0 %v683_v1  ;;  %122 = vmatprep.mubr.bf16.mxu1 %v683_v1 }
   0x2   :  { %35 = vrot.lane.b32.xlu0 %v647_v0, %s682_s17  ;;  %645 = vset.pattern.permute.xlu1 %v683_v1 }
   0x3   :  { %646 = vset.pattern.permute.xlu0 %v683_v1 }
   0x8   :  { %v25_v2 = vld [vmem:[#allocation3] sm:$0xff] }
   0x9   :  { %9 = vsyncpa [#allocation6], 0  ;;  %27 = vst.msk [vmem:[#allocation2] sm:$0xff] %vm23_vm0, %v25_v2  ;;  %vm38_vm1 = vcmask 1047616   ;;  %s684_s18 = smov 126   ;;  %v648_v6 = vld [vmem:[%s807_s1] sm:$0xff]  }
   0xa   :  { %vm83_vm2 = vcmask 130048   ;;  %s685_s21 = smov 124   ;;  %v649_v7 = vld [vmem:[%s807_s1 + $0x8] sm:$0xff]   ;;  %vm79_vm3 = vcmask 1031168   ;;  %v650_v11 = vld [vmem:[%s807_s1 + $0x10] sm:$0xff]   ;;  %vm231_vm4 = vcmask 1014784  }
   0xb   :  { %v651_v15 = vld [vmem:[%s807_s1 + $0x20] sm:$0xff]   ;;  %v652_v16 = vld [vmem:[%s807_s1 + $0x18] sm:$0xff]   ;;  %v653_v17 = vld [vmem:[%s807_s1 + $0x28] sm:$0xff]   ;;  %v686_v34 = vmov 0.0   ;;  %vm309_vm5 = vcmask 31744   ;;  %vm687_vm6 = vmmov 0  }
   0xc   :  { %v484_v49 = vld [vmem:[%s809_s3] sm:$0xff]  ;;  %v485_v51 = vld [vmem:[%s809_s3 + $0x8] sm:$0xff]  ;;  %v656_v61 = vld [vmem:[%s808_s2 + $0x10] sm:$0xff]  }
   0xd   :  { %v657_v52 = vld [vmem:[%s806_s0] sm:$0xff]   ;;  %v654_v56 = vld [vmem:[%s808_s2 + $0x8] sm:$0xff]  }
   0xe   :  { %v655_v57 = vld [vmem:[%s808_s2] sm:$0xff]  }
  0x74   :  { %v36_v3 = vpop.permute.xlu0 %35 }
  0x75   :  { %39 = vst.msk [vmem:[#allocation2] sm:$0xff] %vm38_vm1, %v36_v3 }
  0x76   :  { %40 = vst.msk [vmem:[#allocation2 + $0x8] sm:$0xff] %vm23_vm0, %v36_v3 }
  0x7c   :  { %v56_v5 = vld [vmem:[#allocation2] sm:$0xff] }
  0x7d   :  { %v57_v4 = vld [vmem:[#allocation2 + $0x8] sm:$0xff]  ;;  %75 = vrot.lane.b32.xlu0 %v56_v5, %s684_s18 }
  0x7e   :  { %77 = vrot.lane.b32.xlu1 %v57_v4, %s684_s18  ;;  %159 = vmatprep.subr.bf16.mxu0 %v57_v4 }
  0x7f   :  { %160 = vmatpush1.bf16.msra.mxu0 %v56_v5 }
  0x81   :  { %229 = vrot.lane.b32.xlu0 %v57_v4, %s685_s21 }
  0x82   :  { %227 = vrot.lane.b32.xlu1 %v56_v5, %s685_s21  ;;  %567 = vmatmul.mubr.msk.bf16.vlgmr.msra.gmra.mrb[0].mxu0 %vm83_vm2, %v648_v6 }
  0x83   :  { %201 = vmatprep.mubr.bf16.mxu0 %v683_v1 }
  0x8a   :  { %568 = vmatmul.mubr.msk.bf16.gmra.mrb[4].mxu0 %vm83_vm2, %v649_v7 }
  0x8b   :  { %273 = vmatprep.mubr.bf16.mxu0 %v683_v1 }
  0xef   :  { %v76_v9 = vpop.permute.xlu0 %75 }
  0xf0   :  { %v78_v8 = vpop.permute.xlu1 %77 }
  0xf1   :  { %90 = vmatprep.subr.bf16.mxu1 %v78_v8  ;;  %v80_v10 = vsel %vm79_vm3, %v76_v9, %v78_v8 }
  0xf2   :  { %91 = vmatpush1.bf16.msra.mxu1 %v80_v10 }
  0xf3   :  { %v230_v13 = vpop.permute.xlu0 %229  ;;  %602 = vmatprep.subr.bf16.mxu1 %v686_v34 }
  0xf4   :  { %v228_v12 = vpop.permute.xlu1 %227  ;;  %241 = vmatprep.subr.bf16.mxu0 %v230_v13 }
  0xf5   :  { %v232_v14 = vsel %vm231_vm4, %v228_v12, %v230_v13  ;;  %563 = vmatmul.mubr.msk.bf16.vlgmr.msra.gmra.mrb[0].mxu1 %vm83_vm2, %v650_v11  ;;  %v523_v13 = vlaneseq }
  0xf6   :  { %242 = vmatpush1.bf16.msra.mxu0 %v232_v14  ;;  %132 = vmatprep.mubr.bf16.mxu1 %v683_v1 }
  0xf9   :  { %575 = vmatmul.mubr.msk.bf16.vlgmr.msra.gmra.mrb[0].mxu0 %vm83_vm2, %v651_v15 }
  0xfa   :  { %283 = vmatprep.mubr.bf16.mxu0 %v683_v1 }
  0xfd   :  { %564 = vmatmul.mubr.msk.bf16.gmra.mrb[4].mxu1 %vm83_vm2, %v652_v16 }
  0xfe   :  { %604 = vmatprep.mubr.msk.bf16.mxu1 %vm687_vm6, %v686_v34 }
 0x101   :  { %576 = vmatmul.mubr.msk.bf16.gmra.mrb[4].mxu0 %vm83_vm2, %v653_v17  ;;  %v524_v17 = vshrl.u32 %v523_v13, 7 }
 0x1c8   :  { %v124_v18 = vpop.f32.mrb[0].mxu1 }
 0x1c9   :  { %v126_v19 = vpop.f32.mrb[1].mxu1 }
 0x1ca   :  { %v128_v20 = vpop.f32.mrb[2].mxu1 }
 0x1cb   :  { %v130_v21 = vpop.f32.mrb[3].mxu1 }
 0x1cc   :  { %v275_v22 = vpop.f32.mrb[0].mxu0 }
 0x1cd   :  { %v620_v23 = vadd.f32 %v275_v22, %v124_v18  ;;  %v277_v24 = vpop.f32.mrb[1].mxu0 }
 0x1ce   :  { %v621_v25 = vadd.f32 %v277_v24, %v126_v19  ;;  %v279_v26 = vpop.f32.mrb[2].mxu0  ;;  %v500_v19 = vld [vmem:[%s806_s0] sm:$0x1]  ;;  %s688_s0 = smov [#allocation5]  }
 0x1cf   :  { %v622_v27 = vadd.f32 %v279_v26, %v128_v20  ;;  %v281_v28 = vpop.f32.mrb[3].mxu0  ;;  %v302_v31 = vmax.f32 %v620_v23, 0.0  ;;  %v501_v26 = vunpack.c.l.bf16 %v500_v19 }
 0x1d0   :  { %v623_v29 = vadd.f32 %v281_v28, %v130_v21  ;;  %v134_v30 = vpop.f32.mrb[4].mxu1  ;;  %v303_v35 = vmax.f32 %v621_v25, 0.0 }
 0x1d1   :  { %v304_v32 = vmax.f32 %v622_v27, 0.0  ;;  %v136_v33 = vpop.f32.mrb[5].mxu1  ;;  %v525_v27 = vsub.s32 0, %v524_v17 }
 0x1d2   :  { %v305_v36 = vmax.f32 %v623_v29, 0.0  ;;  %v138_v37 = vpop.f32.mrb[6].mxu1 }
 0x1d3   :  { %v306_v38 = vpack.c.bf16 %v304_v32, %v302_v31  ;;  %v140_v39 = vpop.f32.mrb[7].mxu1 }
 0x1d4   :  { %v307_v40 = vpack.c.bf16 %v305_v36, %v303_v35  ;;  %v285_v41 = vpop.f32.mrb[4].mxu0 }
 0x1d5   :  { %v624_v42 = vadd.f32 %v285_v41, %v134_v30  ;;  %v287_v43 = vpop.f32.mrb[5].mxu0  ;;  %325 = vrot.lane.b32.xlu1 %v306_v38, %s684_s18 }
 0x1d6   :  { %310 = vst.msk [vmem:[#allocation4 + $0x8] sm:$0xff] %vm309_vm5, %v307_v40  ;;  %v625_v44 = vadd.f32 %v287_v43, %v136_v33  ;;  %v289_v45 = vpop.f32.mrb[6].mxu0 }
 0x1d7   :  { %v626_v46 = vadd.f32 %v289_v45, %v138_v37  ;;  %v291_v47 = vpop.f32.mrb[7].mxu0 }
 0x1d8   :  { %v627_v48 = vadd.f32 %v291_v47, %v140_v39 }
 0x1d9   :  { %432 = vrot.lane.b32.xlu1 %v306_v38, %s685_s21 }
 0x1dd   :  { %v317_v50 = vld [vmem:[#allocation4 + $0x8] sm:$0xff]  ;;  %488 = vperm.xlu1 %645, %v484_v49  }
 0x1de   :  { %327 = vrot.lane.b32.xlu0 %v317_v50, %s684_s18 }
 0x1e1   :  { %506 = vrot.lane.b32.xlu1 %v624_v42, %s685_s21 }
 0x1e2   :  { %434 = vrot.lane.b32.xlu0 %v317_v50, %s685_s21 }
 0x1e5   :  { %508 = vrot.lane.b32.xlu1 %v625_v44, %s685_s21 }
 0x1e6   :  { %493 = vperm.xlu0 %646, %v485_v51  }
 0x1e9   :  { %512 = vrot.lane.b32.xlu1 %v627_v48, %s685_s21 }
 0x1ea   :  { %510 = vrot.lane.b32.xlu0 %v626_v46, %s685_s21 }
 0x1ee   :  { %48 = vrot.lane.b32.xlu0 %v657_v52, %s682_s17  ;;  %s544_s17 = sshll.u32 %s688_s0, 4  ;;  %s545_s17 = int_to_ptr.vmem [resolvable:$true] %s544_s17 }
 0x1ef   :  { %s658_s18 = scalar_lea.vmem %s545_s17, 128  ;;  %p663_p1 = scmp.lt.s32.totalorder %s545_s17, %s545_s17 }
 0x1f0   :  { %p659_p0 = scmp.ne.s32.totalorder %s545_s17, %s658_s18  ;;  %p664_p2 = scmp.lt.s32.totalorder %s658_s18, %s658_s18 }
 0x1f2   :  { %p665_p3 = por %p664_p2, %p663_p1 }
 0x1f4   :  { %p666_p4 = pnand %p665_p3, %p659_p0 }
 0x247   :  { %v326_v53 = vpop.permute.xlu1 %325 }
 0x24b   :  { %v433_v59 = vpop.permute.xlu1 %432 }
 0x250   :  { %v328_v54 = vpop.permute.xlu0 %327 }
 0x251   :  { %v329_v55 = vsel %vm79_vm3, %v326_v53, %v328_v54 }
 0x252   :  { %603 = vmatpush3.bf16.msra.mxu1 %v329_v55 }
 0x253   :  { %608 = vmatprep.subr.bf16.mxu1 %v686_v34 }
 0x254   :  { %v435_v58 = vpop.permute.xlu0 %434 }
 0x255   :  { %605 = vmatmul.mubr.msk.bf16.vlgmr.msra.gmra.mrb[8].mxu1 %vm83_vm2, %v654_v56  ;;  %v436_v60 = vsel %vm231_vm4, %v433_v59, %v435_v58 }
 0x256   :  { %609 = vmatpush3.bf16.msra.mxu1 %v306_v38  ;;  %610 = vmatprep.mubr.msk.bf16.mxu1 %vm687_vm6, %v686_v34 }
 0x257   :  { %614 = vmatprep.subr.bf16.mxu1 %v686_v34 }
 0x25c   :  { %v489_v4 = vpop.permute.xlu1 %488 }
 0x25d   :  { %611 = vmatmul.mubr.msk.bf16.vlgmr.msra.gmra.mrb[12].mxu1 %vm83_vm2, %v655_v57 }
 0x25e   :  { %615 = vmatpush3.bf16.msra.mxu1 %v436_v60  ;;  %616 = vmatprep.mubr.msk.bf16.mxu1 %vm687_vm6, %v686_v34  ;;  %v526_v34 = vrot.slane %v501_v26, %v525_v27 }
 0x260   :  { %v507_v7 = vpop.permute.xlu1 %506 }
 0x264   :  { %v509_v14 = vpop.permute.xlu1 %508 }
 0x265   :  { %617 = vmatmul.mubr.msk.bf16.vlgmr.msra.gmra.mrb[16].mxu1 %vm83_vm2, %v656_v61  ;;  %v494_v62 = vpop.permute.xlu0 %493  ;;  %v515_v29 = vsel %vm231_vm4, %v507_v7, %v509_v14 }
 0x268   :  { %v513_v24 = vpop.permute.xlu1 %512 }
 0x269   :  { %v511_v63 = vpop.permute.xlu0 %510 }
 0x26a   :  { %v516_v32 = vsel %vm231_vm4, %v511_v63, %v513_v24 }
 0x26d   :  { %v49_v0 = vpop.permute.xlu0 %48 }
 0x26e   :  { %51 = vst.msk [vmem:[#allocation3] sm:$0xff] %vm23_vm0, %v49_v0 }
 0x328   :  { %v368_v1 = vpop.f32.mrb[8].mxu1 }
 0x329   :  { %v606_v2 = vpop.f32.mrb[9].mxu1 }
 0x32a   :  { %v371_v3 = vpop.f32.mrb[10].mxu1 }
 0x32b   :  { %v607_v5 = vpop.f32.mrb[11].mxu1 }
 0x330   :  { %v417_v6 = vpop.f32.mrb[12].mxu1 }
 0x331   :  { %v418_v8 = vadd.f32 %v417_v6, %v368_v1  ;;  %v612_v9 = vpop.f32.mrb[13].mxu1 }
 0x332   :  { %v420_v10 = vpop.f32.mrb[14].mxu1 }
 0x333   :  { %v421_v11 = vadd.f32 %v420_v10, %v371_v3  ;;  %v613_v12 = vpop.f32.mrb[15].mxu1 }
 0x338   :  { %v475_v15 = vpop.f32.mrb[16].mxu1 }
 0x339   :  { %v482_v16 = vadd.f32 %v475_v15, %v418_v8  ;;  %v618_v18 = vpop.f32.mrb[17].mxu1 }
 0x33a   :  { %v478_v20 = vpop.f32.mrb[18].mxu1 }
 0x33b   :  { %v496_v21 = vadd.f32 %v489_v4, %v482_v16  ;;  %v483_v22 = vadd.f32 %v478_v20, %v421_v11  ;;  %v619_v23 = vpop.f32.mrb[19].mxu1 }
 0x33d   :  { %v498_v25 = vmax.f32 %v496_v21, 0.0  ;;  %v497_v28 = vadd.f32 %v494_v62, %v483_v22 }
 0x33f   :  { %v519_v30 = vadd.f32 %v515_v29, %v498_v25  ;;  %v499_v31 = vmax.f32 %v497_v28, 0.0 }
 0x341   :  { %v521_v33 = vmax.f32 %v519_v30, 0.0  ;;  %v520_v35 = vadd.f32 %v516_v32, %v499_v31 }
 0x343   :  { %v522_v36 = vmax.f32 %v520_v35, 0.0  ;;  %v527_v37 = vmul.f32 %v526_v34, %v521_v33 }
 0x345   :  { %v528_v38 = vmul.f32 %v526_v34, %v522_v36 }
 0x347   :  { %v594_v39 = vpack.c.bf16 %v528_v38, %v527_v37 }
 0x349   :  { %595 = vst [vmem:[#allocation5] sm:$0xff] %v594_v39  }
 0x34a   :  { %669 = shalt.err (!%p666_p4)
}
 0x34b   :  { %s670_s21 = scalar_lea.hbm %s810_s4, 128 }
 0x34c   :  { %p671_p5 = scmp.ne.s32.totalorder %s810_s4, %s670_s21  ;;  %p674_p6 = scmp.lt.u32.totalorder %s670_s21, %s810_s4 }
 0x34e   :  { %p676_p7 = pnand %p674_p6, %p671_p5 }
 0x350   :  { %679 = shalt.err (!%p676_p7)
}
 0x351   :  { %s689_s26 = smov 64   ;;  %s690_s27 = smov 4  }
 0x352   :  { %550 = dma.vmem_to_hbm [thread:$0]  %s545_s17, 128, %s810_s4, [#allocation6], %s689_s26, %s689_s26, %s690_s27  }
 0x353   :  { %680 = dma.done.wait [#allocation6], 128  }
 0x354   :  { %681 = vsyncadd [#allocation6], 4294967168 }
 0x355   :  { %554 = vsyncpa [#allocation6], 1 }

</bundles_post_ra>
